<compile_context>
chip_gen: v5e
topology: v5e:2x2
jax: 0.10.0
libtpu: 0.0.40
codegen_flags: <defaults>
</compile_context>

<pallas_src>
import functools

import jax
import jax.numpy as jnp
from jax.experimental import pallas as pl
from jax.experimental.pallas import tpu as pltpu


def down_wt_kernel(x_ref, w_ref, shift_ref, o_ref):
    # x_ref:     (4C, tile_m)   space-to-depth input tile, M on the lane axis
    # w_ref:     (out_ch, 4C)   Haar + 1x1-conv + BN-scale folded weight
    # shift_ref: (out_ch, 1)    folded conv-bias + BN shift (f32)
    # o_ref:     (out_ch, tile_m)
    acc = jnp.dot(w_ref[...], x_ref[...], preferred_element_type=jnp.float32)
    o_ref[...] = jnp.maximum(acc + shift_ref[...], 0.0)


def _pick_tile(m_total, per_col_bytes, max_tile_m):
    """Lane tile: full extent if it fits, else a large multiple of 128 that keeps the
    double-buffered VMEM footprint small and (preferably) divides m_total."""
    vmem_budget = 24 << 20                       # headroom under the 32 MiB VMEM limit
    cap = min(int(max_tile_m), vmem_budget // (2 * per_col_bytes))
    cap = max(128, cap)
    if m_total <= cap:
        return m_total, 1                        # full extent: no remainder, always legal
    cap = (cap // 128) * 128
    tile = cap
    for cand in range(cap, cap // 2 - 1, -128):  # prefer a divisor (no ragged edge block)
        if cand > 0 and m_total % cand == 0:
            tile = cand
            break
    # If no divisor was found the last block is ragged; Pallas masks the edge block and
    # each output column only depends on its own input column, so this stays correct.
    return tile, pl.cdiv(m_total, tile)


@functools.partial(jax.jit, static_argnames=("eps", "max_tile_m", "use_bf16"))
def down_wt_forward(x_nchw, conv_w, conv_b, bn_gamma, bn_beta, bn_mean, bn_var,
                    *, eps=1e-5, max_tile_m=65536, use_bf16=True):
    """Forward pass of Down_wt.  x_nchw: (N, C, H, W) -> (N, out_ch, H//2, W//2)."""
    N, C, H, W = x_nchw.shape
    assert H % 2 == 0 and W % 2 == 0
    out_ch = conv_w.shape[0]
    Hh, Wh = H // 2, W // 2
    K = 4 * C
    Mp = Hh * Wh                                  # per-image GEMM width (lane axis)
    in_dtype = jnp.bfloat16 if use_bf16 else jnp.float32

    # ---- single jit-fused space-to-depth pass: NCHW -> (N, 4C, Hh*Wh) -----------------
    # K-axis row order: [s00(C) | s01(C) | s10(C) | s11(C)], s_rc = x[..., 2h+r, 2w+c].
    x = x_nchw.astype(jnp.float32)                               # matches x.float()
    xs = x.reshape(N, C, Hh, 2, Wh, 2).astype(in_dtype)          # cast fuses into the copy
    xT = jnp.transpose(xs, (0, 3, 5, 1, 2, 4)).reshape(N, K, Mp)

    # ---- fold Haar butterfly + BN scale/shift into the 1x1-conv weight ----------------
    H2 = 0.5 * jnp.array([[1.,  1.,  1.,  1.],
                          [1.,  1., -1., -1.],
                          [1., -1.,  1., -1.],
                          [1., -1., -1.,  1.]], dtype=jnp.float32)
    T = jnp.kron(H2, jnp.eye(C, dtype=jnp.float32))              # (4C, 4C), symmetric
    Wb = conv_w.reshape(out_ch, K).T.astype(jnp.float32)         # (4C[band], out_ch)
    inv_std = jax.lax.rsqrt(bn_var.astype(jnp.float32) + eps)
    scale = bn_gamma.astype(jnp.float32) * inv_std               # (out_ch,)
    w_t = ((T @ Wb) * scale[None, :]).T.astype(in_dtype)         # (out_ch, 4C[s-order])
    shift = (bn_beta.astype(jnp.float32)
             + (conv_b.astype(jnp.float32) - bn_mean.astype(jnp.float32)) * scale
             ).reshape(out_ch, 1)

    # ---- tiling: big lane tiles, grid = (image, M-tile) --------------------------------
    in_bytes = 2 if use_bf16 else 4
    per_col_bytes = K * in_bytes + out_ch * 4                    # x-tile col + out-tile col
    tile_m, grid_m = _pick_tile(Mp, per_col_bytes, max_tile_m)

    out = pl.pallas_call(
        down_wt_kernel,
        out_shape=jax.ShapeDtypeStruct((N, out_ch, Mp), jnp.float32),
        grid_spec=pltpu.PrefetchScalarGridSpec(
            num_scalar_prefetch=0,
            grid=(N, grid_m),
            in_specs=[
                pl.BlockSpec((None, K, tile_m), lambda n, i: (n, 0, i)),
                pl.BlockSpec((out_ch, K), lambda n, i: (0, 0)),
                pl.BlockSpec((out_ch, 1), lambda n, i: (0, 0)),
            ],
            out_specs=pl.BlockSpec((None, out_ch, tile_m), lambda n, i: (n, 0, i)),
        ),
        compiler_params=pltpu.CompilerParams(
            dimension_semantics=("parallel", "parallel"),
            vmem_limit_bytes=32 << 20,
        ),
    )(xT, w_t, shift)

    # Free (row-major) reshape back to NCHW — no post-kernel transpose pass.
    return out.reshape(N, out_ch, Hh, Wh)


def down_wt_reference(x_nchw, conv_w, conv_b, bn_gamma, bn_beta, bn_mean, bn_var, eps=1e-5):
    """Pure-JAX reference with the same band convention (for correctness check)."""
    N, C, H, W = x_nchw.shape
    out_ch = conv_w.shape[0]
    x = jnp.transpose(x_nchw, (0, 2, 3, 1)).astype(jnp.float32)
    s00 = x[:, 0::2, 0::2, :]; s01 = x[:, 0::2, 1::2, :]
    s10 = x[:, 1::2, 0::2, :]; s11 = x[:, 1::2, 1::2, :]
    yl = (s00 + s01 + s10 + s11) * 0.5
    b1 = (s00 + s01 - s10 - s11) * 0.5
    b2 = (s00 - s01 + s10 - s11) * 0.5
    b3 = (s00 - s01 - s10 + s11) * 0.5
    cat = jnp.concatenate([yl, b1, b2, b3], axis=-1)
    w = conv_w.reshape(out_ch, 4 * C).T.astype(jnp.float32)
    y = cat @ w + conv_b
    inv_std = 1.0 / jnp.sqrt(bn_var + eps)
    y = (y - bn_mean) * inv_std * bn_gamma + bn_beta
    y = jnp.maximum(y, 0.0)
    return jnp.transpose(y, (0, 3, 1, 2))


if __name__ == "__main__":
    # Small shapes consistent with the module: in_ch=4, out_ch=8, x = (2, 4, 16, 16)
    in_ch, out_ch = 4, 8
    N, H, W = 2, 16, 16

    key = jax.random.PRNGKey(0)
    kx, kw, kb, kg, kbt = jax.random.split(key, 5)

    x = jax.random.normal(kx, (N, in_ch, H, W), dtype=jnp.float32)

    # Deterministic parameter init (synthetic — not a checkpoint load).
    conv_w = jax.random.normal(kw, (out_ch, 4 * in_ch, 1, 1), dtype=jnp.float32) * 0.1
    conv_b = jax.random.normal(kb, (out_ch,), dtype=jnp.float32) * 0.1
    bn_gamma = 1.0 + 0.1 * jax.random.normal(kg, (out_ch,), dtype=jnp.float32)
    bn_beta = 0.1 * jax.random.normal(kbt, (out_ch,), dtype=jnp.float32)
    bn_mean = jnp.zeros((out_ch,), dtype=jnp.float32)   # BatchNorm inference mode
    bn_var = jnp.ones((out_ch,), dtype=jnp.float32)     # with default running stats

    args = (x, conv_w, conv_b, bn_gamma, bn_beta, bn_mean, bn_var)
    y_ref = down_wt_reference(*args)

    # Exact-f32 path (matches the module's autocast-disabled .float() numerics).
    y_f32 = down_wt_forward(*args, use_bf16=False)
    jax.block_until_ready(y_f32)
    assert y_f32.shape == (N, out_ch, H // 2, W // 2), y_f32.shape
    assert jnp.allclose(y_f32, y_ref, atol=1e-4, rtol=1e-4), \
        float(jnp.max(jnp.abs(y_f32 - y_ref)))

    # Default bf16-input path (perf default; f32 accumulate/epilogue) — relaxed tolerance
    # because x/weights are quantized to bf16 before the folded Haar+conv GEMM.
    y_bf16 = down_wt_forward(*args)
    jax.block_until_ready(y_bf16)
    assert y_bf16.shape == (N, out_ch, H // 2, W // 2), y_bf16.shape
    assert jnp.allclose(y_bf16, y_ref, atol=3e-2, rtol=3e-2), \
        float(jnp.max(jnp.abs(y_bf16 - y_ref)))

    print("KERNEL_OK")
</pallas_src>

<mosaic_0001>
module attributes {stable_mosaic.version = 11 : i64} {
  func.func @down_wt_kernel(%arg0: i32, %arg1: i32, %arg2: memref<1x16x64xf32, #tpu.memory_space<vmem>>, %arg3: memref<8x16xf32, #tpu.memory_space<vmem>>, %arg4: memref<8x1xf32, #tpu.memory_space<vmem>>, %arg5: memref<1x8x64xf32, #tpu.memory_space<vmem>>) attributes {dimension_semantics = [#tpu.dimension_semantics<parallel>, #tpu.dimension_semantics<parallel>], iteration_bounds = array<i64: 2, 1>, scalar_prefetch = 0 : i64, scratch_operands = 0 : i64, tpu.core_type = #tpu.core_type<tc>, window_params = [{transform_indices = @transform_0, window_bounds = array<i64: 1, 16, 64>}, {pipeline_mode = #tpu.pipeline_mode<synchronous>, transform_indices = @transform_1, window_bounds = array<i64: 8, 16>}, {pipeline_mode = #tpu.pipeline_mode<synchronous>, transform_indices = @transform_2, window_bounds = array<i64: 8, 1>}, {transform_indices = @transform_3, window_bounds = array<i64: 1, 8, 64>}]} {
    %c0 = arith.constant 0 : index
    %c0_0 = arith.constant 0 : index
    %0 = vector.load %arg3[%c0, %c0_0] : memref<8x16xf32, #tpu.memory_space<vmem>>, vector<8x16xf32>
    %c0_1 = arith.constant 0 : index
    %c0_2 = arith.constant 0 : index
    %c0_3 = arith.constant 0 : index
    %1 = vector.load %arg2[%c0_1, %c0_2, %c0_3] : memref<1x16x64xf32, #tpu.memory_space<vmem>>, vector<1x16x64xf32>
    %2 = vector.shape_cast %1 : vector<1x16x64xf32> to vector<16x64xf32>
    %cst = arith.constant dense<0.000000e+00> : vector<8x64xf32>
    %3 = tpu.matmul %0, %2, %cst {dimension_numbers = #tpu.dot_dimension_numbers<[1], [0], [0], [1], [0, 0, 1, 1], [], []>} : vector<8x16xf32>, vector<16x64xf32>, vector<8x64xf32> -> vector<8x64xf32>
    %c0_4 = arith.constant 0 : index
    %c0_5 = arith.constant 0 : index
    %4 = vector.load %arg4[%c0_4, %c0_5] : memref<8x1xf32, #tpu.memory_space<vmem>>, vector<8x1xf32>
    %5 = vector.broadcast %4 : vector<8x1xf32> to vector<8x64xf32>
    %6 = arith.addf %3, %5 : vector<8x64xf32>
    %cst_6 = arith.constant 0.000000e+00 : f32
    %7 = vector.broadcast %cst_6 : f32 to vector<8x64xf32>
    %8 = arith.maximumf %6, %7 : vector<8x64xf32>
    %c0_7 = arith.constant 0 : index
    %c0_8 = arith.constant 0 : index
    %c0_9 = arith.constant 0 : index
    %9 = vector.load %arg5[%c0_7, %c0_8, %c0_9] : memref<1x8x64xf32, #tpu.memory_space<vmem>>, vector<1x8x64xf32>
    %10 = vector.shape_cast %9 : vector<1x8x64xf32> to vector<8x64xf32>
    %11 = vector.shape_cast %8 : vector<8x64xf32> to vector<1x8x64xf32>
    tpu.vector_store %arg5[%c0_7, %c0_8, %c0_9], %11 {strides = array<i32>} : memref<1x8x64xf32, #tpu.memory_space<vmem>>, vector<1x8x64xf32>,
    return
  }
  func.func @transform_0(%arg0: i32, %arg1: i32) -> (i32, i32, i32) {
    %c0_i32 = arith.constant 0 : i32
    %c0_i32_0 = arith.constant 0 : i32
    return %arg0, %c0_i32, %arg1 : i32, i32, i32
  }
  func.func @transform_1(%arg0: i32, %arg1: i32) -> (i32, i32) {
    %c0_i32 = arith.constant 0 : i32
    %c0_i32_0 = arith.constant 0 : i32
    %c0_i32_1 = arith.constant 0 : i32
    return %c0_i32, %c0_i32_0 : i32, i32
  }
  func.func @transform_2(%arg0: i32, %arg1: i32) -> (i32, i32) {
    %c0_i32 = arith.constant 0 : i32
    %c0_i32_0 = arith.constant 0 : i32
    %c0_i32_1 = arith.constant 0 : i32
    return %c0_i32, %c0_i32_0 : i32, i32
  }
  func.func @transform_3(%arg0: i32, %arg1: i32) -> (i32, i32, i32) {
    %c0_i32 = arith.constant 0 : i32
    %c0_i32_0 = arith.constant 0 : i32
    return %arg0, %c0_i32, %arg1 : i32, i32, i32
  }
}

</mosaic_0001>

<bundles_post_ra>
// kernel: down_wt_forward.1
= control target key start
LH: loop header
LB: loop body
LE: loop exit
PB: predicated region body
PF: predicated region fallthrough
CT: control target
= control target key end

     0   :  { %s396_s12 = smov 0   ;;  %s398_s13 = smov 0   ;;  %s435_s0 = inlined_call_operand.vmem [shape: f32[2,16,64], index: 0, kind: input, shape index: {}]   ;;  %s436_s1 = inlined_call_operand.vmem [shape: f32[8,16], index: 1, kind: input, shape index: {}]   ;;  %s437_s2 = inlined_call_operand.vmem [shape: f32[8,1], index: 2, kind: input, shape index: {}]   ;;  %s438_s3 = inlined_call_operand.vmem [shape: f32[2,8,64], index: 3, kind: output, shape index: {}]  }
   0x1   :  { %s400_s14 = smov 0  }
   0x2 LB: > { %s25_s15 = sadd.s32 1, %s369_s13  ;;  %p317_p0 = scmp.ge.s32.totalorder %s373_s14, 1  ;;  %s373_s14 = sphi %s400_s14, %s13_s14   ;;  %s369_s13 = sphi %s398_s13, %s440_s13   ;;  %s365_s12 = sphi %s396_s12, %s439_s12  }
   0x3   : > { %p27_p1 = scmp.ge.s32.totalorder %s25_s15, 2  ;;  %p156_p2 = scmp.lt.s32.totalorder %s373_s14, 3 }
   0x5   : > { %s442_s15 = smov (%p27_p1, %s25_s15), 0  ;;  %p157_p3 = pnand %p317_p0, %p156_p2 }
   0x6   : > { %p185_p4 = scmp.lt.s32.totalorder (!%p157_p3), %s365_s12, 1 }
   0x7   : > { %160 = sbr.rel (%p157_p3) target bundleno = 150 (0x96), region = 32 }
   0xc   : > { %v203_v0 = vld [vmem:[%s437_s2] sm:$0xff]  ;;  %v375_v1 = vmov 0   ;;  %s444_s12 = smov (!%p185_p4, %s365_s12), 1  ;;  %vm209_vm0 = vcmask 130048   ;;  %vm234_vm1 = vcmask 523264  }
   0xd   : > { %350 = vset.pattern.permute.xlu0 %v375_v1  ;;  %s324_s18 = sshll.u32 %s444_s12, 4  ;;  %v200_v4 = vld [vmem:[%s436_s1] sm:$0xff]  ;;  %s320_s24 = sshll.u32 %s444_s12, 3 }
   0xe   : > { %206 = vperm.xlu0 %350, %v203_v0   ;;  %s192_s21 = scalar_lea.vmem %s435_s0, %s324_s18  ;;  %s199_s27 = scalar_lea.vmem %s438_s3, %s320_s24 }
   0xf   : > { %v202_v2 = vld [vmem:[%s192_s21 + $0x8] sm:$0xff]  ;;  %v201_v3 = vld [vmem:[%s192_s21] sm:$0xff] }
  0x10   : > { %227 = vmatpush.msra.mxu0 %v202_v2 }
  0x12   : > { %228 = vmatpush.msra.mxu0 %v201_v3 }
  0x13   : > { %321 = vmatmul.msk.f32.vlgmr.msra.gmra.mxu0 %vm209_vm0, %v200_v4 }
  0x80   : > { %v207_v5 = vpop.permute.xlu0 %206 }
  0x90   : > { %v230_v6 = vpop.f32.mrf.mxu0 }
  0x91   : > { %v231_v7 = vadd.f32 %v230_v6, %v207_v5 }
  0x93   : > { %v233_v8 = vmax.f32 %v231_v7, 0.0 }
  0x95   : > { %235 = vst.msk [vmem:[%s199_s27] sm:$0xff] %vm234_vm1, %v233_v8 }
  0x96 PF: > { %s13_s14 = sadd.s32 1, %s373_s14   ;;  %s439_s12 = smov %s369_s13 }
  0x97   : > { %p10_p5 = scmp.ge.s32.totalorder %s13_s14, 4   ;;  %s440_s13 = smov %s442_s15 }
  0x99   :  { %12 = sbr.rel (!%p10_p5) target bundleno = 2 (0x2), region = 62 }

</bundles_post_ra>
